<compile_context>
chip_gen: v5e
topology: v5e:2x2
jax: 0.10.0
libtpu: 0.0.40
codegen_flags: <defaults>
</compile_context>

<pallas_src>
import functools

import jax
import jax.numpy as jnp
from jax.experimental import pallas as pl
from jax.experimental.pallas import tpu as pltpu


def _round_up(n, m):
    return (n + m - 1) // m * m


def _vmem_limit_bytes():
    """Generation-aware VMEM budget with ~15% headroom for Mosaic scratch."""
    cap = 128 * 1024 * 1024
    try:
        info = pltpu.get_tpu_info()
        cap = int(getattr(info, "vmem_capacity_bytes", cap) or cap)
    except Exception:
        pass  # non-TPU tracing context / older API: keep conservative default
    # 128 MiB (v5e/v6e) -> ~108 MiB ; 64 MiB (v7x) -> ~54 MiB.
    return int(cap * 0.85)


def _pick_bn(d, itemsize):
    """Output-column tile per projection (fused weight block is (D, 2*bn))."""
    if d % 128 != 0 or d <= 512:
        # Small or ragged feature dim: single full-width block (legal because
        # block dim == array dim).  Weight is tiny enough to stay resident.
        return d
    # Stream the fused weight in ~<=8 MiB blocks so double-buffered weight +
    # x/out tiles fit comfortably even in v7x's 64 MiB VMEM.
    max_bn = max(128, (8 * 1024 * 1024) // (2 * d * itemsize))
    for cand in (1024, 512, 256, 128):
        if cand <= max_bn and d % cand == 0:
            return cand
    return 128


def _pick_bm(b, block_b):
    """Batch (row) tile: MXU-friendly multiples, megacore-aware."""
    if b <= block_b:
        return b  # one full-batch tile (block dim == array dim is always legal)
    bm = _round_up(min(block_b, b), 256)
    # Keep >= 2 batch grid steps so v7x's two TensorCores both get work.
    bm = min(bm, _round_up(-(-b // 2), 256))
    return max(bm, 256)


def highway_kernel(x_ref, w_ref, b_ref, o_ref, *, bn, n_tiled):
    x = x_ref[...]

    # One fused MXU matmul per tile: [bm, D] @ [D, 2*bn] -> [bm, 2*bn].
    # Operands stay in their native dtype (bf16 stays bf16); f32 accumulation.
    z = jnp.dot(x, w_ref[...], preferred_element_type=jnp.float32)
    z = z + b_ref[...].astype(jnp.float32)          # broadcast [1, 2*bn]

    out = jnp.maximum(z[:, :bn], 0.0)               # relu(linear)   (VPU)
    gate = jax.nn.sigmoid(z[:, bn:])                # sigmoid(gate)  (EUP)

    if n_tiled:
        # Residual slice of x matching this column tile (x block stays
        # resident across the inner N axis; this is just a VMEM re-read).
        start = pl.multiple_of(pl.program_id(1) * bn, 128)
        x_res = x_ref[:, pl.ds(start, bn)].astype(jnp.float32)
    else:
        x_res = x.astype(jnp.float32)

    o_ref[...] = (x_res + gate * (out - x_res)).astype(o_ref.dtype)


@functools.partial(jax.jit, static_argnames=("bm", "bn", "n_tiled"))
def _highway_impl(x, w_cat, b_cat, *, bm, bn, n_tiled):
    b_rows, d = x.shape
    nb = pl.cdiv(b_rows, bm)
    nn = d // bn if n_tiled else 1
    itemsize = jnp.dtype(x.dtype).itemsize

    cost = pl.CostEstimate(
        flops=4 * b_rows * d * d,                 # two fused D->D projections
        transcendentals=b_rows * d,               # sigmoid
        bytes_accessed=(x.size + w_cat.size + b_cat.size + b_rows * d) * itemsize,
    )

    kernel = functools.partial(highway_kernel, bn=bn, n_tiled=n_tiled)

    return pl.pallas_call(
        kernel,
        out_shape=jax.ShapeDtypeStruct((b_rows, d), x.dtype),
        grid_spec=pltpu.PrefetchScalarGridSpec(
            num_scalar_prefetch=0,
            grid=(nb, nn),                        # N axis innermost: x tile reused
            in_specs=[
                pl.BlockSpec((bm, d), lambda i, j: (i, 0)),        # x tile
                pl.BlockSpec((d, 2 * bn), lambda i, j: (0, j)),    # fused W block
                pl.BlockSpec((1, 2 * bn), lambda i, j: (0, j)),    # fused b block
            ],
            out_specs=pl.BlockSpec((bm, bn), lambda i, j: (i, j)),
        ),
        compiler_params=pltpu.CompilerParams(
            dimension_semantics=("parallel", "arbitrary"),
            vmem_limit_bytes=_vmem_limit_bytes(),
        ),
        cost_estimate=cost,
    )(x, w_cat, b_cat)


def highway(x, w_lin, b_lin, w_gate, b_gate, *, block_b=512):
    """x: [B, D]; w_*: [D, D] already transposed to (in, out); b_*: [D].

    The weight fusion / dtype cast below is one-time parameter prep in a real
    model, not per-step work.
    """
    b_rows, d = x.shape
    dtype = x.dtype
    itemsize = jnp.dtype(dtype).itemsize

    bn = _pick_bn(d, itemsize)
    n_tiled = bn != d
    nblk = d // bn if n_tiled else 1

    # Block-interleaved fusion of the two projections along the output dim:
    # column block j of w_cat = [w_lin[:, j*bn:(j+1)*bn] | w_gate[:, ...]],
    # so one (D, 2*bn) weight block carries matched lin+gate columns.
    w_lin = w_lin.astype(dtype)
    w_gate = w_gate.astype(dtype)
    b_lin = b_lin.astype(dtype)
    b_gate = b_gate.astype(dtype)
    w_cat = jnp.concatenate(
        [w_lin.reshape(d, nblk, bn), w_gate.reshape(d, nblk, bn)], axis=2
    ).reshape(d, 2 * d)
    b_cat = jnp.concatenate(
        [b_lin.reshape(nblk, bn), b_gate.reshape(nblk, bn)], axis=1
    ).reshape(1, 2 * d)

    bm = _pick_bm(b_rows, block_b)
    return _highway_impl(x, w_cat, b_cat, bm=bm, bn=bn, n_tiled=n_tiled)


def reference_highway(x, w_lin, b_lin, w_gate, b_gate):
    out = jax.nn.relu(x @ w_lin + b_lin)
    gate = jax.nn.sigmoid(x @ w_gate + b_gate)
    return gate * out + (1.0 - gate) * x


if __name__ == "__main__":
    key = jax.random.PRNGKey(0)
    B, D = 8, 32  # small demo shapes: batch=8, hidden=32

    k_x, k_wl, k_wg, k_bg = jax.random.split(key, 4)

    x = jax.random.normal(k_x, (B, D), dtype=jnp.float32)

    # Deterministic parameter init mirroring Highway.initialize():
    #   linear.weight ~ U(-0.05, 0.05), linear.bias = 0; gate params synthetic.
    # Stored already transposed to [D_in, D_out].
    w_lin = jax.random.uniform(k_wl, (D, D), minval=-0.05, maxval=0.05,
                               dtype=jnp.float32)
    b_lin = jnp.zeros((D,), dtype=jnp.float32)
    w_gate = jax.random.uniform(k_wg, (D, D), minval=-0.1, maxval=0.1,
                                dtype=jnp.float32)
    b_gate = jax.random.uniform(k_bg, (D,), minval=-0.1, maxval=0.1,
                                dtype=jnp.float32)

    y = highway(x, w_lin, b_lin, w_gate, b_gate)
    jax.block_until_ready(y)

    y_ref = reference_highway(x, w_lin, b_lin, w_gate, b_gate)
    assert y.shape == y_ref.shape, "shape mismatch vs reference"
    assert jnp.allclose(y, y_ref, atol=1e-5, rtol=1e-5), "mismatch vs reference"

    print("KERNEL_OK")
</pallas_src>

<mosaic_0001>
module attributes {stable_mosaic.version = 11 : i64} {
  func.func @highway_kernel(%arg0: i32, %arg1: i32, %arg2: memref<8x32xf32, #tpu.memory_space<vmem>>, %arg3: memref<32x64xf32, #tpu.memory_space<vmem>>, %arg4: memref<1x64xf32, #tpu.memory_space<vmem>>, %arg5: memref<8x32xf32, #tpu.memory_space<vmem>>) attributes {dimension_semantics = [#tpu.dimension_semantics<parallel>, #tpu.dimension_semantics<arbitrary>], iteration_bounds = array<i64: 1, 1>, scalar_prefetch = 0 : i64, scratch_operands = 0 : i64, tpu.core_type = #tpu.core_type<tc>, window_params = [{transform_indices = @transform_0, window_bounds = array<i64: 8, 32>}, {transform_indices = @transform_1, window_bounds = array<i64: 32, 64>}, {transform_indices = @transform_2, window_bounds = array<i64: 1, 64>}, {transform_indices = @transform_3, window_bounds = array<i64: 8, 32>}]} {
    %c0 = arith.constant 0 : index
    %c0_0 = arith.constant 0 : index
    %0 = vector.load %arg2[%c0, %c0_0] : memref<8x32xf32, #tpu.memory_space<vmem>>, vector<8x32xf32>
    %c0_1 = arith.constant 0 : index
    %c0_2 = arith.constant 0 : index
    %1 = vector.load %arg3[%c0_1, %c0_2] : memref<32x64xf32, #tpu.memory_space<vmem>>, vector<32x64xf32>
    %cst = arith.constant dense<0.000000e+00> : vector<8x64xf32>
    %2 = tpu.matmul %0, %1, %cst {dimension_numbers = #tpu.dot_dimension_numbers<[1], [0], [0], [1], [0, 0, 1, 1], [], []>} : vector<8x32xf32>, vector<32x64xf32>, vector<8x64xf32> -> vector<8x64xf32>
    %c0_3 = arith.constant 0 : index
    %c0_4 = arith.constant 0 : index
    %3 = vector.load %arg4[%c0_3, %c0_4] : memref<1x64xf32, #tpu.memory_space<vmem>>, vector<1x64xf32>
    %4 = vector.broadcast %3 : vector<1x64xf32> to vector<8x64xf32>
    %5 = arith.addf %2, %4 : vector<8x64xf32>
    %6 = vector.extract_strided_slice %5 {offsets = [0, 0], sizes = [8, 32], strides = [1, 1]} : vector<8x64xf32> to vector<8x32xf32>
    %cst_5 = arith.constant 0.000000e+00 : f32
    %7 = vector.broadcast %cst_5 : f32 to vector<8x32xf32>
    %8 = arith.maximumf %6, %7 : vector<8x32xf32>
    %9 = vector.extract_strided_slice %5 {offsets = [0, 32], sizes = [8, 32], strides = [1, 1]} : vector<8x64xf32> to vector<8x32xf32>
    %10 = arith.negf %9 : vector<8x32xf32>
    %11 = math.exp %10 : vector<8x32xf32>
    %cst_6 = arith.constant 1.000000e+00 : f32
    %12 = vector.broadcast %cst_6 : f32 to vector<8x32xf32>
    %13 = arith.addf %12, %11 : vector<8x32xf32>
    %14 = arith.divf %12, %13 : vector<8x32xf32>
    %15 = arith.subf %8, %0 : vector<8x32xf32>
    %16 = arith.mulf %14, %15 : vector<8x32xf32>
    %17 = arith.addf %0, %16 : vector<8x32xf32>
    %c0_7 = arith.constant 0 : index
    %c0_8 = arith.constant 0 : index
    %18 = vector.load %arg5[%c0_7, %c0_8] : memref<8x32xf32, #tpu.memory_space<vmem>>, vector<8x32xf32>
    tpu.vector_store %arg5[%c0_7, %c0_8], %17 {strides = array<i32>} : memref<8x32xf32, #tpu.memory_space<vmem>>, vector<8x32xf32>,
    return
  }
  func.func @transform_0(%arg0: i32, %arg1: i32) -> (i32, i32) {
    %c0_i32 = arith.constant 0 : i32
    %c0_i32_0 = arith.constant 0 : i32
    return %arg0, %c0_i32 : i32, i32
  }
  func.func @transform_1(%arg0: i32, %arg1: i32) -> (i32, i32) {
    %c0_i32 = arith.constant 0 : i32
    %c0_i32_0 = arith.constant 0 : i32
    return %c0_i32, %arg1 : i32, i32
  }
  func.func @transform_2(%arg0: i32, %arg1: i32) -> (i32, i32) {
    %c0_i32 = arith.constant 0 : i32
    %c0_i32_0 = arith.constant 0 : i32
    return %c0_i32, %arg1 : i32, i32
  }
  func.func @transform_3(%arg0: i32, %arg1: i32) -> (i32, i32) {
    %c0_i32 = arith.constant 0 : i32
    return %arg0, %arg1 : i32, i32
  }
}

</mosaic_0001>

<bundles_post_ra>
// kernel: _highway_impl.1
= control target key start
LH: loop header
LB: loop body
LE: loop exit
PB: predicated region body
PF: predicated region fallthrough
CT: control target
= control target key end

     0   :  { %8 = vsyncpa [#allocation3], 0  ;;  %s261_s0 = inlined_call_operand.hbm [shape: f32[8,32], index: 0, kind: input, shape index: {}]   ;;  %s262_s1 = inlined_call_operand.hbm [shape: f32[32,64], index: 1, kind: input, shape index: {}]   ;;  %s263_s2 = inlined_call_operand.vmem [shape: f32[1,64], index: 2, kind: input, shape index: {}]   ;;  %s264_s3 = inlined_call_operand.hbm [shape: f32[8,32], index: 3, kind: output, shape index: {}]  }
   0x1   :  { %9 = vsyncpa [#allocation6], 0 }
   0x2   :  { %10 = vsyncpa [#allocation4], 0  ;;  %s16_s14 = sshll.u32 %s261_s0, 4  ;;  %s220_s15 = smov [#allocation2]   ;;  %s17_s14 = int_to_ptr.hbm [resolvable:$true] %s16_s14 }
   0x3   :  { %s18_s16 = sshll.u32 %s220_s15, 4  ;;  %s26_s19 = sshll.u32 %s262_s1, 4  ;;  %s19_s16 = int_to_ptr.vmem [resolvable:$true] %s18_s16  ;;  %s27_s19 = int_to_ptr.hbm [resolvable:$true] %s26_s19 }
   0x4   :  { %21 = dma.hbm_to_vmem [thread:$0]  %s17_s14, 128, %s19_s16, [#allocation3]  }
   0x5   :  { %s221_s20 = smov [#allocation5]   ;;  %s222_s22 = smov 128  }
   0x6   :  { %s28_s21 = sshll.u32 %s221_s20, 4  ;;  %s223_s23 = smov 8   ;;  %s29_s21 = int_to_ptr.vmem [resolvable:$true] %s28_s21 }
   0x7   :  { %34 = dma.hbm_to_vmem [thread:$0]  %s27_s19, 512, %s29_s21, [#allocation6], %s222_s22, %s222_s22, %s223_s23  }
   0x8   :  { %214 = dma.done.wait [#allocation3], 128  }
   0x9   :  { %215 = vsyncadd [#allocation3], 4294967168 }
   0xa   :  { %216 = dma.done.wait [#allocation6], 512  }
   0xb   :  { %217 = vsyncadd [#allocation6], 4294966784  ;;  %v49_v0 = vld [vmem:[#allocation5 + $0x18] sm:$0xff]  ;;  %v48_v1 = vld [vmem:[#allocation5 + $0x10] sm:$0xff]  ;;  %vm54_vm0 = vcmask 261120   ;;  %s224_s24 = smov 32  }
   0xc   :  { %70 = vmatpush.msra.mxu0 %v49_v0  ;;  %v47_v2 = vld [vmem:[#allocation5 + $0x8] sm:$0xff]  ;;  %v46_v3 = vld [vmem:[#allocation5] sm:$0xff]  ;;  %v45_v4 = vld [vmem:[#allocation2] sm:$0xff]  ;;  %s226_s25 = smov [#allocation7]   ;;  %s117_s29 = sshll.u32 %s264_s3, 4  ;;  %s118_s29 = int_to_ptr.hbm [resolvable:$true] %s117_s29 }
   0xd   :  { %v137_v5 = vld [vmem:[%s263_s2] ss:$0 sm:$0xff]  ;;  %s225_s2 = smov 96   ;;  %s115_s26 = sshll.u32 %s226_s25, 4  ;;  %s116_s26 = int_to_ptr.vmem [resolvable:$true] %s115_s26 }
   0xe   :  { %71 = vmatpush.msra.mxu0 %v48_v1 }
  0x10   :  { %72 = vmatpush.msra.mxu0 %v47_v2 }
  0x12   :  { %73 = vmatpush.msra.mxu0 %v46_v3 }
  0x13   :  { %128 = vmatmul.msk.f32.vlgmr.msra.gmra.mxu0 %vm54_vm0, %v45_v4 }
  0x90   :  { %v75_v6 = vpop.f32.mrf.mxu0 }
  0x91   :  { %v76_v7 = vadd.f32 %v137_v5, %v75_v6 }
  0x93   :  { %v78_v8 = vmax.f32 %v76_v7, 0.0  ;;  %v129_v10 = vmul.f32 -1.442695, %v76_v7 }
  0x95   :  { %v98_v9 = vsub.f32 %v78_v8, %v45_v4  ;;  %138 = vpow2.f32 %v129_v10 }
  0x97   :  { %100 = vrot.lane.b32.xlu0 %v98_v9, %s224_s24 }
  0x9b   :  { %v139_v11 = vpop.eup %138 }
  0x9c   :  { %v82_v12 = vadd.f32 1.0, %v139_v11 }
  0x9e   :  { %140 = vrcp.f32 %v82_v12  ;;  %v94_v18 = vand.u32 2147483648, %v82_v12  ;;  %vm88_vm2 = vweird.f32 %v82_v12  ;;  %v92_v19 = vand.u32 2147483647, %v82_v12 }
  0xa0   :  { %v95_v21 = vor.u32 1.1754944e-38, %v94_v18  ;;  %vm93_vm4 = vcmp.eq.f32.partialorder %v92_v19, 8.507059e+37 }
  0xa4   :  { %v141_v13 = vpop.eup %140 }
  0xa5   :  { %v84_v14 = vmul.f32 %v141_v13, %v82_v12  ;;  %vm89_vm1 = vweird.f32 %v141_v13 }
  0xa6   :  { %vm90_vm3 = vmor %vm88_vm2, %vm89_vm1 }
  0xa7   :  { %v85_v15 = vsub.f32 1.0, %v84_v14 }
  0xa9   :  { %v86_v16 = vmul.f32 %v141_v13, %v85_v15 }
  0xab   :  { %v87_v17 = vadd.f32 %v141_v13, %v86_v16 }
  0xad   :  { %v91_v20 = vsel %vm90_vm3, %v141_v13, %v87_v17 }
  0xae   :  { %v96_v22 = vsel %vm93_vm4, %v95_v21, %v91_v20 }
 0x109   :  { %v101_v23 = vpop.permute.xlu0 %100 }
 0x10a   :  { %v103_v24 = vmul.f32 %v101_v23, %v96_v22 }
 0x10c   :  { %105 = vrot.lane.b32.xlu0 %v103_v24, %s225_s2 }
 0x17e   :  { %v106_v25 = vpop.permute.xlu0 %105 }
 0x17f   :  { %v108_v26 = vadd.f32 %v106_v25, %v45_v4 }
 0x181   :  { %109 = vst.msk [vmem:[#allocation7] sm:$0xff] %vm54_vm0, %v108_v26 }
 0x182   :  { %120 = dma.vmem_to_hbm [thread:$0]  %s116_s26, 128, %s118_s29, [#allocation4]  }
 0x183   :  { %218 = dma.done.wait [#allocation4], 128  }
 0x184   :  { %219 = vsyncadd [#allocation4], 4294967168 }
 0x185   :  { %125 = vsyncpa [#allocation3], 1 }
 0x186   :  { %126 = vsyncpa [#allocation6], 1 }
 0x187   :  { %127 = vsyncpa [#allocation4], 1 }

</bundles_post_ra>
